<compile_context>
chip_gen: v5e
topology: v5e:2x2
jax: 0.10.0
libtpu: 0.0.40
codegen_flags: <defaults>
</compile_context>

<pallas_src>
import jax
import jax.numpy as jnp
from jax.experimental import pallas as pl
from jax.experimental.pallas import tpu as pltpu

LANE = 128      # vreg lane width
SUBLANE = 16    # batch rows padded to multiples of 16 (covers f32 & bf16 packing)


def _ceil_to(x, m):
    return ((x + m - 1) // m) * m


def actor_kernel(x_ref, w1_ref, b1_ref, w2_ref, b2_ref, w3_ref, b3_ref, o_ref):
    """Fused 3-layer MLP on one (tb, num_inputs) batch tile; h1/h2 never touch HBM."""
    x = x_ref[...].astype(jnp.bfloat16)                                   # (tb, IN)
    h1 = jnp.dot(x, w1_ref[...], preferred_element_type=jnp.float32) + b1_ref[...]
    h1 = jnp.maximum(h1, 0.0).astype(jnp.bfloat16)                        # (tb, H_P)
    h2 = jnp.dot(h1, w2_ref[...], preferred_element_type=jnp.float32) + b2_ref[...]
    h2 = jnp.maximum(h2, 0.0).astype(jnp.bfloat16)                        # (tb, H_P)
    h3 = jnp.dot(h2, w3_ref[...], preferred_element_type=jnp.float32) + b3_ref[...]
    o_ref[...] = jnp.tanh(h3)                                             # (tb, A) f32


def init_actor_params(key, num_inputs, num_actions, hidden_size, init_w=0.003):
    """Mirrors PyTorch nn.Linear defaults: U(-1/sqrt(fan_in), 1/sqrt(fan_in)) for
    layers 1,2 and U(-init_w, init_w) for layer 3.  Weights stored transposed
    (in_features, out_features) in bf16; biases (1, out_features) in f32."""
    k1, k2, k3, k4, k5, k6 = jax.random.split(key, 6)
    bound1 = 1.0 / jnp.sqrt(num_inputs)
    bound2 = 1.0 / jnp.sqrt(hidden_size)
    w1 = jax.random.uniform(k1, (num_inputs, hidden_size), jnp.float32, -bound1, bound1)
    b1 = jax.random.uniform(k2, (1, hidden_size), jnp.float32, -bound1, bound1)
    w2 = jax.random.uniform(k3, (hidden_size, hidden_size), jnp.float32, -bound2, bound2)
    b2 = jax.random.uniform(k4, (1, hidden_size), jnp.float32, -bound2, bound2)
    w3 = jax.random.uniform(k5, (hidden_size, num_actions), jnp.float32, -init_w, init_w)
    b3 = jax.random.uniform(k6, (1, num_actions), jnp.float32, -init_w, init_w)
    return {
        "w1": w1.astype(jnp.bfloat16), "b1": b1,
        "w2": w2.astype(jnp.bfloat16), "b2": b2,
        "w3": w3.astype(jnp.bfloat16), "b3": b3,
    }


def prepare_actor_params(params):
    """Pad ONLY the hidden dim (e.g. 32 -> 128) so the big matmuls / relu
    intermediates are lane-dense.  Input and action dims stay unpadded.
    Zero padding is exact: padded hidden lanes remain 0 through relu."""
    w1, b1 = params["w1"], params["b1"]
    w2, b2 = params["w2"], params["b2"]
    w3, b3 = params["w3"], params["b3"]
    h = w1.shape[1]
    h_p = _ceil_to(h, LANE)
    pad_cols = lambda a: jnp.pad(a, ((0, 0), (0, h_p - h)))
    pad_rows = lambda a: jnp.pad(a, ((0, h_p - h), (0, 0)))
    return {
        "w1": pad_cols(w1).astype(jnp.bfloat16),
        "b1": pad_cols(b1).astype(jnp.float32),
        "w2": jnp.pad(w2, ((0, h_p - h), (0, h_p - h))).astype(jnp.bfloat16),
        "b2": pad_cols(b2).astype(jnp.float32),
        "w3": pad_rows(w3).astype(jnp.bfloat16),
        "b3": b3.astype(jnp.float32),
    }


def _default_min_tiles():
    """>= 2 grid steps on v7x so the 'parallel' batch axis shards over both
    TensorCores; single big tile on the single-TC v5e/v6e parts."""
    try:
        kind = jax.devices()[0].device_kind.lower()
        return 2 if "v7" in kind else 1
    except Exception:  # pragma: no cover - defensive
        return 1


def _choose_batch_tiling(B, tile_b, min_tiles):
    """Balanced batch tiles: split B as evenly as possible into >= min_tiles
    chunks, each a multiple of SUBLANE rows (avoids padding B=600 up to 1024)."""
    nt = max(int(min_tiles), pl.cdiv(B, tile_b))
    nt = min(nt, max(1, pl.cdiv(B, SUBLANE)))     # never create all-padding tiles
    tb = _ceil_to(pl.cdiv(B, nt), SUBLANE)
    nt = pl.cdiv(B, tb)
    return tb, nt


def actor_forward(state, padded_params, tile_b=1024, min_tiles=None):
    """state: (B, num_inputs) f32; padded_params: output of prepare_actor_params.
    Returns (B, num_actions) f32.  Wrap in jax.jit (tile_b / min_tiles static) so
    the tiny batch-row pad and final row-slice fuse into a single dispatch."""
    w1, b1 = padded_params["w1"], padded_params["b1"]
    w2, b2 = padded_params["w2"], padded_params["b2"]
    w3, b3 = padded_params["w3"], padded_params["b3"]

    B, d_in = state.shape
    h_p = w1.shape[1]
    n_act = w3.shape[1]
    if min_tiles is None:
        min_tiles = _default_min_tiles()

    tb, nt = _choose_batch_tiling(B, tile_b, min_tiles)
    b_p = nt * tb

    # Only batch rows get zero-padded; feature/action lanes stay unpadded.
    x = state if b_p == B else jnp.pad(state, ((0, b_p - B), (0, 0)))

    const = lambda i: (0, 0)   # weights/biases: VMEM-resident, same block every step

    # Cost hints: the MXU work the kernel actually performs + actual HBM bytes.
    flops = 2 * b_p * (d_in * h_p + h_p * h_p + h_p * n_act)
    bytes_accessed = (x.size * 4 + b_p * n_act * 4
                      + (w1.size + w2.size + w3.size) * 2
                      + (b1.size + b2.size + b3.size) * 4)
    # Actual footprint: resident weights/biases (x2 buffering worst case),
    # double-buffered activation/output tiles, headroom for VMEM-staged h1/h2.
    vmem_est = (2 * (w1.size + w2.size + w3.size) * 2
                + 2 * (b1.size + b2.size + b3.size) * 4
                + 2 * (tb * d_in * 4 + tb * n_act * 4)
                + 3 * tb * h_p * 4)
    vmem_limit = int(min(max(2 * vmem_est, 4 * 1024 * 1024), 32 * 1024 * 1024))

    out = pl.pallas_call(
        actor_kernel,
        out_shape=jax.ShapeDtypeStruct((b_p, n_act), jnp.float32),
        grid_spec=pltpu.PrefetchScalarGridSpec(
            num_scalar_prefetch=0,
            grid=(nt,),
            in_specs=[
                pl.BlockSpec((tb, d_in), lambda i: (i, 0)),   # state tile (unpadded lanes)
                pl.BlockSpec((d_in, h_p), const),             # W1 (bf16, resident)
                pl.BlockSpec((1, h_p), const),                # b1
                pl.BlockSpec((h_p, h_p), const),               # W2
                pl.BlockSpec((1, h_p), const),                # b2
                pl.BlockSpec((h_p, n_act), const),             # W3
                pl.BlockSpec((1, n_act), const),              # b3
            ],
            out_specs=pl.BlockSpec((tb, n_act), lambda i: (i, 0)),   # unpadded actions
        ),
        compiler_params=pltpu.CompilerParams(
            dimension_semantics=("parallel",),    # batch axis -> both TCs on v7x
            vmem_limit_bytes=vmem_limit,
        ),
        cost_estimate=pl.CostEstimate(
            flops=flops, transcendentals=b_p * n_act, bytes_accessed=bytes_accessed),
    )(x, w1, b1, w2, b2, w3, b3)

    return out if b_p == B else out[:B]


def actor_ref(state, params):
    """Pure-JAX reference with the same bf16-weights / f32-accumulate recipe
    on the UNPADDED parameters."""
    x = state.astype(jnp.bfloat16)
    h1 = jnp.maximum(
        jnp.dot(x, params["w1"], preferred_element_type=jnp.float32) + params["b1"], 0.0)
    h1 = h1.astype(jnp.bfloat16)
    h2 = jnp.maximum(
        jnp.dot(h1, params["w2"], preferred_element_type=jnp.float32) + params["b2"], 0.0)
    h2 = h2.astype(jnp.bfloat16)
    h3 = jnp.dot(h2, params["w3"], preferred_element_type=jnp.float32) + params["b3"]
    return jnp.tanh(h3)


# TODO(synk): Actor.get_action (host-side numpy conversion / unsqueeze) is a Python
# wrapper, not a kernel; call the jitted actor_forward on a (1, num_inputs) device
# array instead so the B=1 inference path is a single dispatch.

if __name__ == "__main__":
    batch = 2
    num_inputs = 8      # state dimension
    num_actions = 4
    hidden_size = 32

    key = jax.random.PRNGKey(0)
    kp, kx = jax.random.split(key)
    raw_params = init_actor_params(kp, num_inputs, num_actions, hidden_size)
    params = prepare_actor_params(raw_params)        # pad hidden dim once, up front
    state = jax.random.normal(kx, (batch, num_inputs), jnp.float32)

    # One jitted dispatch: batch-row pad + fused 3-layer Pallas kernel + row slice.
    fwd = jax.jit(actor_forward, static_argnames=("tile_b", "min_tiles"))
    out = jax.block_until_ready(fwd(state, params))

    ref = actor_ref(state, raw_params)
    assert out.shape == (batch, num_actions), out.shape
    assert jnp.allclose(out, ref, atol=1e-4, rtol=1e-4), (out, ref)

    print("KERNEL_OK")
</pallas_src>

<mosaic_0001>
module attributes {stable_mosaic.version = 11 : i64} {
  func.func @actor_kernel(%arg0: i32, %arg1: memref<16x8xf32, #tpu.memory_space<vmem>>, %arg2: memref<8x128xbf16, #tpu.memory_space<vmem>>, %arg3: memref<1x128xf32, #tpu.memory_space<vmem>>, %arg4: memref<128x128xbf16, #tpu.memory_space<vmem>>, %arg5: memref<1x128xf32, #tpu.memory_space<vmem>>, %arg6: memref<128x4xbf16, #tpu.memory_space<vmem>>, %arg7: memref<1x4xf32, #tpu.memory_space<vmem>>, %arg8: memref<16x4xf32, #tpu.memory_space<vmem>>) attributes {dimension_semantics = [#tpu.dimension_semantics<parallel>], iteration_bounds = array<i64: 1>, scalar_prefetch = 0 : i64, scratch_operands = 0 : i64, tpu.core_type = #tpu.core_type<tc>, window_params = [{transform_indices = @transform_0, window_bounds = array<i64: 16, 8>}, {pipeline_mode = #tpu.pipeline_mode<synchronous>, transform_indices = @transform_1, window_bounds = array<i64: 8, 128>}, {pipeline_mode = #tpu.pipeline_mode<synchronous>, transform_indices = @transform_2, window_bounds = array<i64: 1, 128>}, {pipeline_mode = #tpu.pipeline_mode<synchronous>, transform_indices = @transform_3, window_bounds = array<i64: 128, 128>}, {pipeline_mode = #tpu.pipeline_mode<synchronous>, transform_indices = @transform_4, window_bounds = array<i64: 1, 128>}, {pipeline_mode = #tpu.pipeline_mode<synchronous>, transform_indices = @transform_5, window_bounds = array<i64: 128, 4>}, {pipeline_mode = #tpu.pipeline_mode<synchronous>, transform_indices = @transform_6, window_bounds = array<i64: 1, 4>}, {transform_indices = @transform_7, window_bounds = array<i64: 16, 4>}]} {
    %c0 = arith.constant 0 : index
    %c0_0 = arith.constant 0 : index
    %0 = vector.load %arg1[%c0, %c0_0] : memref<16x8xf32, #tpu.memory_space<vmem>>, vector<16x8xf32>
    %1 = arith.truncf %0 : vector<16x8xf32> to vector<16x8xbf16>
    %c0_1 = arith.constant 0 : index
    %c0_2 = arith.constant 0 : index
    %2 = vector.load %arg2[%c0_1, %c0_2] : memref<8x128xbf16, #tpu.memory_space<vmem>>, vector<8x128xbf16>
    %cst = arith.constant dense<0.000000e+00> : vector<16x128xf32>
    %3 = tpu.matmul %1, %2, %cst {dimension_numbers = #tpu.dot_dimension_numbers<[1], [0], [0], [1], [0, 0, 1, 1], [], []>} : vector<16x8xbf16>, vector<8x128xbf16>, vector<16x128xf32> -> vector<16x128xf32>
    %c0_3 = arith.constant 0 : index
    %c0_4 = arith.constant 0 : index
    %4 = vector.load %arg3[%c0_3, %c0_4] : memref<1x128xf32, #tpu.memory_space<vmem>>, vector<1x128xf32>
    %5 = vector.broadcast %4 : vector<1x128xf32> to vector<16x128xf32>
    %6 = arith.addf %3, %5 : vector<16x128xf32>
    %cst_5 = arith.constant 0.000000e+00 : f32
    %7 = vector.broadcast %cst_5 : f32 to vector<16x128xf32>
    %8 = arith.maximumf %6, %7 : vector<16x128xf32>
    %9 = arith.truncf %8 : vector<16x128xf32> to vector<16x128xbf16>
    %c0_6 = arith.constant 0 : index
    %c0_7 = arith.constant 0 : index
    %10 = vector.load %arg4[%c0_6, %c0_7] : memref<128x128xbf16, #tpu.memory_space<vmem>>, vector<128x128xbf16>
    %cst_8 = arith.constant dense<0.000000e+00> : vector<16x128xf32>
    %11 = tpu.matmul %9, %10, %cst_8 {dimension_numbers = #tpu.dot_dimension_numbers<[1], [0], [0], [1], [0, 0, 1, 1], [], []>} : vector<16x128xbf16>, vector<128x128xbf16>, vector<16x128xf32> -> vector<16x128xf32>
    %c0_9 = arith.constant 0 : index
    %c0_10 = arith.constant 0 : index
    %12 = vector.load %arg5[%c0_9, %c0_10] : memref<1x128xf32, #tpu.memory_space<vmem>>, vector<1x128xf32>
    %13 = vector.broadcast %12 : vector<1x128xf32> to vector<16x128xf32>
    %14 = arith.addf %11, %13 : vector<16x128xf32>
    %cst_11 = arith.constant 0.000000e+00 : f32
    %15 = vector.broadcast %cst_11 : f32 to vector<16x128xf32>
    %16 = arith.maximumf %14, %15 : vector<16x128xf32>
    %17 = arith.truncf %16 : vector<16x128xf32> to vector<16x128xbf16>
    %c0_12 = arith.constant 0 : index
    %c0_13 = arith.constant 0 : index
    %18 = vector.load %arg6[%c0_12, %c0_13] : memref<128x4xbf16, #tpu.memory_space<vmem>>, vector<128x4xbf16>
    %cst_14 = arith.constant dense<0.000000e+00> : vector<16x4xf32>
    %19 = tpu.matmul %17, %18, %cst_14 {dimension_numbers = #tpu.dot_dimension_numbers<[1], [0], [0], [1], [0, 0, 1, 1], [], []>} : vector<16x128xbf16>, vector<128x4xbf16>, vector<16x4xf32> -> vector<16x4xf32>
    %c0_15 = arith.constant 0 : index
    %c0_16 = arith.constant 0 : index
    %20 = vector.load %arg7[%c0_15, %c0_16] : memref<1x4xf32, #tpu.memory_space<vmem>>, vector<1x4xf32>
    %21 = vector.broadcast %20 : vector<1x4xf32> to vector<16x4xf32>
    %22 = arith.addf %19, %21 : vector<16x4xf32>
    %23 = math.tanh %22 : vector<16x4xf32>
    %c0_17 = arith.constant 0 : index
    %c0_18 = arith.constant 0 : index
    %24 = vector.load %arg8[%c0_17, %c0_18] : memref<16x4xf32, #tpu.memory_space<vmem>>, vector<16x4xf32>
    tpu.vector_store %arg8[%c0_17, %c0_18], %23 {strides = array<i32>} : memref<16x4xf32, #tpu.memory_space<vmem>>, vector<16x4xf32>,
    return
  }
  func.func @transform_0(%arg0: i32) -> (i32, i32) {
    %c0_i32 = arith.constant 0 : i32
    %c0_i32_0 = arith.constant 0 : i32
    return %arg0, %c0_i32 : i32, i32
  }
  func.func @transform_1(%arg0: i32) -> (i32, i32) {
    %c0_i32 = arith.constant 0 : i32
    %c0_i32_0 = arith.constant 0 : i32
    %c0_i32_1 = arith.constant 0 : i32
    return %c0_i32, %c0_i32_0 : i32, i32
  }
  func.func @transform_2(%arg0: i32) -> (i32, i32) {
    %c0_i32 = arith.constant 0 : i32
    %c0_i32_0 = arith.constant 0 : i32
    %c0_i32_1 = arith.constant 0 : i32
    return %c0_i32, %c0_i32_0 : i32, i32
  }
  func.func @transform_3(%arg0: i32) -> (i32, i32) {
    %c0_i32 = arith.constant 0 : i32
    %c0_i32_0 = arith.constant 0 : i32
    %c0_i32_1 = arith.constant 0 : i32
    return %c0_i32, %c0_i32_0 : i32, i32
  }
  func.func @transform_4(%arg0: i32) -> (i32, i32) {
    %c0_i32 = arith.constant 0 : i32
    %c0_i32_0 = arith.constant 0 : i32
    %c0_i32_1 = arith.constant 0 : i32
    return %c0_i32, %c0_i32_0 : i32, i32
  }
  func.func @transform_5(%arg0: i32) -> (i32, i32) {
    %c0_i32 = arith.constant 0 : i32
    %c0_i32_0 = arith.constant 0 : i32
    %c0_i32_1 = arith.constant 0 : i32
    return %c0_i32, %c0_i32_0 : i32, i32
  }
  func.func @transform_6(%arg0: i32) -> (i32, i32) {
    %c0_i32 = arith.constant 0 : i32
    %c0_i32_0 = arith.constant 0 : i32
    %c0_i32_1 = arith.constant 0 : i32
    return %c0_i32, %c0_i32_0 : i32, i32
  }
  func.func @transform_7(%arg0: i32) -> (i32, i32) {
    %c0_i32 = arith.constant 0 : i32
    %c0_i32_0 = arith.constant 0 : i32
    return %arg0, %c0_i32 : i32, i32
  }
}

</mosaic_0001>

<bundles_post_ra>
// kernel: actor_forward.1
= control target key start
LH: loop header
LB: loop body
LE: loop exit
PB: predicated region body
PF: predicated region fallthrough
CT: control target
= control target key end

     0   :  { %vm39_vm0 = vcmask 1043456   ;;  %vm35_vm1 = vcmask 64512   ;;  %vm229_vm2 = vcmask 31744   ;;  %s436_s1 = inlined_call_operand.vmem [shape: bf16[8,128], index: 1, kind: input, shape index: {}]   ;;  %s437_s0 = inlined_call_operand.vmem [shape: f32[16,8], index: 0, kind: input, shape index: {}]   ;;  %s438_s3 = inlined_call_operand.vmem [shape: bf16[128,128], index: 3, kind: input, shape index: {}]   ;;  %s439_s2 = inlined_call_operand.vmem [shape: f32[1,128], index: 2, kind: input, shape index: {}]   ;;  %s440_s4 = inlined_call_operand.vmem [shape: f32[1,128], index: 4, kind: input, shape index: {}]   ;;  %s441_s5 = inlined_call_operand.vmem [shape: bf16[128,4], index: 5, kind: input, shape index: {}]   ;;  %s442_s6 = inlined_call_operand.vmem [shape: f32[1,4], index: 6, kind: input, shape index: {}]   ;;  %s443_s7 = inlined_call_operand.vmem [shape: f32[16,4], index: 7, kind: output, shape index: {}]  }
   0x1   :  { %v30_v0 = vld [vmem:[%s436_s1] sm:$0xf]  ;;  %v28_v2 = vld [vmem:[%s437_s0 + $0x8] sm:$0xff]  ;;  %v308_v5 = vld [vmem:[%s438_s3 + $0x38] sm:$0xff] }
   0x2   :  { %v27_v1 = vld [vmem:[%s437_s0] sm:$0xff]  ;;  %v41_v3 = vsel %vm39_vm0, %v30_v0, 0  ;;  %128 = vmatpush.bf16.msra.mxu1 %v308_v5  ;;  %v307_v6 = vld [vmem:[%s438_s3 + $0x30] sm:$0xff]  ;;  %v306_v7 = vld [vmem:[%s438_s3 + $0x28] sm:$0xff] }
   0x3   :  { %v29_v4 = vpack.c.bf16 %v28_v2, %v27_v1  ;;  %50 = vmatpush.bf16.msra.mxu0 %v41_v3  ;;  %v305_v8 = vld [vmem:[%s438_s3 + $0x20] sm:$0xff]  ;;  %v304_v9 = vld [vmem:[%s438_s3 + $0x18] sm:$0xff]  ;;  %v303_v10 = vld [vmem:[%s438_s3 + $0x10] sm:$0xff] }
   0x4   :  { %v302_v11 = vld [vmem:[%s438_s3 + $0x8] sm:$0xff]  ;;  %v301_v12 = vld [vmem:[%s438_s3] sm:$0xff]  ;;  %v316_v13 = vld [vmem:[%s441_s5 + $0x38] sm:$0xff] }
   0x5   :  { %213 = vmatpush.bf16.msra.mxu2 %v316_v13  ;;  %v315_v14 = vld [vmem:[%s441_s5 + $0x30] sm:$0xff]  ;;  %v314_v15 = vld [vmem:[%s441_s5 + $0x28] sm:$0xff]  ;;  %v313_v16 = vld [vmem:[%s441_s5 + $0x20] sm:$0xff] }
   0x6   :  { %236 = vmatmul.msk.bf16.vlgmr.msra.gmra.mxu0 %vm35_vm1, %v29_v4  ;;  %129 = vmatpush.bf16.msra.mxu1 %v307_v6  ;;  %v317_v18 = vld [vmem:[%s439_s2] ss:$0 sm:$0xff]  ;;  %v312_v25 = vld [vmem:[%s441_s5 + $0x18] sm:$0xff]  ;;  %v311_v26 = vld [vmem:[%s441_s5 + $0x10] sm:$0xff] }
   0x7   :  { %v310_v27 = vld [vmem:[%s441_s5 + $0x8] sm:$0xff]  ;;  %v309_v28 = vld [vmem:[%s441_s5] sm:$0xff] }
   0x8   :  { %v318_v30 = vld [vmem:[%s440_s4] ss:$0 sm:$0xff] }
   0x9   :  { %214 = vmatpush.bf16.msra.mxu2 %v315_v14  ;;  %v319_v37 = vld [vmem:[%s442_s6] ss:$0 sm:$0xff] }
   0xa   :  { %130 = vmatpush.bf16.msra.mxu1 %v306_v7 }
   0xd   :  { %215 = vmatpush.bf16.msra.mxu2 %v314_v15 }
   0xe   :  { %131 = vmatpush.bf16.msra.mxu1 %v305_v8 }
  0x11   :  { %216 = vmatpush.bf16.msra.mxu2 %v313_v16 }
  0x12   :  { %132 = vmatpush.bf16.msra.mxu1 %v304_v9 }
  0x15   :  { %217 = vmatpush.bf16.msra.mxu2 %v312_v25 }
  0x16   :  { %133 = vmatpush.bf16.msra.mxu1 %v303_v10 }
  0x19   :  { %218 = vmatpush.bf16.msra.mxu2 %v311_v26 }
  0x1a   :  { %134 = vmatpush.bf16.msra.mxu1 %v302_v11 }
  0x1d   :  { %219 = vmatpush.bf16.msra.mxu2 %v310_v27 }
  0x1e   :  { %135 = vmatpush.bf16.msra.mxu1 %v301_v12 }
  0x21   :  { %220 = vmatpush.bf16.msra.mxu2 %v309_v28 }
  0x83   :  { %v52_v17 = vpop.f32.mrf.mxu0 }
  0x84   :  { %v53_v19 = vadd.f32 %v317_v18, %v52_v17 }
  0x86   :  { %v57_v22 = vmax.f32 %v53_v19, 0.0 }
  0x8b   :  { %v54_v20 = vpop.f32.mrf.mxu0 }
  0x8c   :  { %v55_v21 = vadd.f32 %v317_v18, %v54_v20 }
  0x8e   :  { %v58_v23 = vmax.f32 %v55_v21, 0.0 }
  0x90   :  { %v59_v24 = vpack.c.bf16 %v58_v23, %v57_v22 }
  0x92   :  { %136 = vmatmul.bf16.vlgmr.msra.gmra.mxu1 %v59_v24 }
 0x10f   :  { %v137_v29 = vpop.f32.mrf.mxu1 }
 0x110   :  { %v138_v31 = vadd.f32 %v318_v30, %v137_v29 }
 0x112   :  { %v142_v34 = vmax.f32 %v138_v31, 0.0 }
 0x117   :  { %v139_v32 = vpop.f32.mrf.mxu1 }
 0x118   :  { %v140_v33 = vadd.f32 %v318_v30, %v139_v32 }
 0x11a   :  { %v143_v35 = vmax.f32 %v140_v33, 0.0 }
 0x11c   :  { %v144_v36 = vpack.c.bf16 %v143_v35, %v142_v34 }
 0x11e   :  { %221 = vmatmul.bf16.vlgmr.msra.gmra.mxu2 %v144_v36 }
 0x1a1   :  { %v222_v38 = vpop.f32.mrf.mxu2 }
 0x1a2   :  { %v223_v39 = vadd.f32 %v319_v37, %v222_v38 }
 0x1a4   :  { %320 = vtanh.f32 %v223_v39 }
 0x1a9   :  { %v224_v40 = vpop.f32.mrf.mxu2 }
 0x1aa   :  { %v321_v41 = vpop.eup %320  ;;  %v225_v42 = vadd.f32 %v319_v37, %v224_v40 }
 0x1ab   :  { %230 = vst.msk [vmem:[%s443_s7] sm:$0xff] %vm229_vm2, %v321_v41 }
 0x1ac   :  { %322 = vtanh.f32 %v225_v42 }
 0x1b2   :  { %v323_v43 = vpop.eup %322 }
 0x1b3   :  { %231 = vst.msk [vmem:[%s443_s7 + $0x8] sm:$0xff] %vm229_vm2, %v323_v43 }

</bundles_post_ra>
